<compile_context>
chip_gen: v7x
topology: tpu7x:2x2x1
jax: 0.10.0
libtpu: 0.0.40
codegen_flags: <defaults>
</compile_context>

<pallas_src>
import functools

import jax
import jax.numpy as jnp
from jax.experimental import pallas as pl
from jax.experimental.pallas import tpu as pltpu


def _maxpool_kernel(x_ref, o_ref, *, kernel_size, stride):
    # x_ref: (tile_rows * stride, W) input rows feeding this output tile.
    # o_ref: (tile_rows, out_w) pooled output rows.
    tile_rows, out_w = o_ref.shape
    w = x_ref.shape[1]

    # ---- Pool along H (sublane axis): strided taps read directly from the
    # ref; fold with max in the native dtype, starting from tap 0.
    hmax = x_ref[pl.ds(0, tile_rows, stride), :]
    for kh in range(1, kernel_size):
        hmax = jnp.maximum(hmax, x_ref[pl.ds(kh, tile_rows, stride), :])

    # ---- Pool along W (lane axis): tap_kw[:, j] = hmax[:, j*stride + kw] is
    # produced by a one-hot (w, out_w) selection matrix on the MXU; each
    # product column has exactly one 1.0 coefficient so values pass through
    # exactly (precision=HIGHEST keeps full f32 mantissas). Taps fold with max.
    row_ids = jax.lax.broadcasted_iota(jnp.int32, (w, out_w), 0)
    col_ids = jax.lax.broadcasted_iota(jnp.int32, (w, out_w), 1)
    acc = None
    for kw in range(kernel_size):
        sel = jnp.where(row_ids == col_ids * stride + kw, 1.0, 0.0)
        sel = sel.astype(hmax.dtype)
        tap = jnp.dot(
            hmax,
            sel,
            precision=jax.lax.Precision.HIGHEST,
            preferred_element_type=jnp.float32,
        )
        acc = tap if acc is None else jnp.maximum(acc, tap)

    o_ref[...] = acc.astype(o_ref.dtype)


def _pick_tile_rows(r_out, in_bytes_per_out_row):
    """Largest multiple-of-8 divisor of r_out whose input block is ~<= 2 MiB."""
    budget = 2 * 1024 * 1024  # per input block (Pallas double-buffers it)
    cap = max(8, budget // max(in_bytes_per_out_row, 1))
    if r_out >= 32:
        # Keep at least ~4 grid steps so the DMA pipeline overlaps with compute.
        cap = min(cap, r_out // 4)
    best = r_out  # full extent is always a legal block shape
    t = 8
    while t <= min(r_out, cap):
        if r_out % t == 0:
            best = t
        t += 8
    return best


def maxpool2d(x, kernel_size=2, stride=2, padding=0):
    """MaxPool2d forward matching the PyTorch reference. x is NCHW (float)."""
    if stride != kernel_size:
        # TODO(synk): overlapping windows (stride != kernel_size) need halo /
        # Element-indexed input blocks; not implemented here.
        raise NotImplementedError("Pallas path assumes stride == kernel_size.")
    if not jnp.issubdtype(x.dtype, jnp.floating):
        # TODO(synk): integer dtypes would need a non-MXU lane compaction.
        raise NotImplementedError("Pallas path implemented for float dtypes.")

    n, c, h, w = x.shape
    if padding > 0:
        # TODO(synk): fold the -inf halo into the kernel (masked max) instead of
        # an extra full-size HBM pad pass; the module's default uses padding=0.
        x = jnp.pad(
            x,
            ((0, 0), (0, 0), (padding, padding), (padding, padding)),
            mode="constant",
            constant_values=-jnp.inf,
        )
        h += 2 * padding
        w += 2 * padding

    out_h = (h - kernel_size) // stride + 1
    out_w = (w - kernel_size) // stride + 1

    # Rows past the last full window are never read; crop so H == out_h*stride
    # and the flattened row pairing below never straddles images. (No crop is
    # needed along W: unused trailing columns are simply never selected.)
    h_use = out_h * stride
    if h_use != h:
        x = x[:, :, :h_use, :]

    # Free reshape (no data movement): NCHW -> (N*C*H, W). Because
    # stride == kernel_size and H % stride == 0, output row r pools input rows
    # stride*r + kh of this flattened view, so one 2-D kernel covers all images.
    r_in = n * c * h_use
    r_out = n * c * out_h
    x2 = x.reshape(r_in, w)

    itemsize = jnp.dtype(x.dtype).itemsize
    tile_rows = _pick_tile_rows(r_out, stride * w * itemsize)
    grid = (r_out // tile_rows,)

    kernel = functools.partial(
        _maxpool_kernel, kernel_size=kernel_size, stride=stride
    )

    out2 = pl.pallas_call(
        kernel,
        out_shape=jax.ShapeDtypeStruct((r_out, out_w), x.dtype),
        grid=grid,
        in_specs=[pl.BlockSpec((tile_rows * stride, w), lambda i: (i, 0))],
        out_specs=pl.BlockSpec((tile_rows, out_w), lambda i: (i, 0)),
        compiler_params=pltpu.CompilerParams(
            dimension_semantics=("parallel",),   # megacore-shardable on v7x
            vmem_limit_bytes=32 * 1024 * 1024,   # explicit; blocks are ~2 MiB
        ),
    )(x2)

    return out2.reshape(n, c, out_h, out_w)


def _maxpool2d_ref(x, kernel_size=2, stride=2, padding=0):
    """Pure-JAX reference mirroring the PyTorch loop implementation."""
    if padding > 0:
        x = jnp.pad(
            x,
            ((0, 0), (0, 0), (padding, padding), (padding, padding)),
            mode="constant",
            constant_values=-jnp.inf,
        )
    n, c, h, w = x.shape
    out_h = (h - kernel_size) // stride + 1
    out_w = (w - kernel_size) // stride + 1
    cols = []
    for i in range(out_h):
        row = []
        for j in range(out_w):
            hs, ws = i * stride, j * stride
            row.append(
                jnp.max(
                    x[:, :, hs:hs + kernel_size, ws:ws + kernel_size],
                    axis=(-2, -1),
                )
            )
        cols.append(jnp.stack(row, axis=-1))
    return jnp.stack(cols, axis=-2)


if __name__ == "__main__":
    key = jax.random.PRNGKey(0)
    x = jax.random.normal(key, (2, 4, 16, 16), dtype=jnp.float32)

    out = maxpool2d(x, kernel_size=2, stride=2, padding=0)
    out = jax.block_until_ready(out)

    ref = _maxpool2d_ref(x, kernel_size=2, stride=2, padding=0)
    assert out.shape == (2, 4, 8, 8), out.shape
    assert jnp.allclose(out, ref), "Pallas maxpool output mismatch vs reference"

    print("KERNEL_OK")
</pallas_src>

<mosaic_0001>
module attributes {stable_mosaic.version = 11 : i64} {
  func.func @_maxpool_kernel(%arg0: i32, %arg1: memref<32x16xf32, #tpu.memory_space<vmem>>, %arg2: memref<16x8xf32, #tpu.memory_space<vmem>>) attributes {dimension_semantics = [#tpu.dimension_semantics<parallel>], iteration_bounds = array<i64: 4>, scalar_prefetch = 0 : i64, scratch_operands = 0 : i64, tpu.core_type = #tpu.core_type<tc>, window_params = [{transform_indices = @transform_0, window_bounds = array<i64: 32, 16>}, {transform_indices = @transform_1, window_bounds = array<i64: 16, 8>}]} {
    %c0 = arith.constant 0 : index
    %c0_0 = arith.constant 0 : index
    %0 = tpu.strided_load %arg1[%c0, %c0_0] {strides = array<i32: 2, 1>} : memref<32x16xf32, #tpu.memory_space<vmem>>, vector<16x16xf32>
    %c1 = arith.constant 1 : index
    %c0_1 = arith.constant 0 : index
    %1 = tpu.strided_load %arg1[%c1, %c0_1] {strides = array<i32: 2, 1>} : memref<32x16xf32, #tpu.memory_space<vmem>>, vector<16x16xf32>
    %2 = arith.maximumf %0, %1 : vector<16x16xf32>
    %3 = tpu.iota {dimensions = array<i32: 0>} : vector<16x8xi32>
    %4 = tpu.iota {dimensions = array<i32: 1>} : vector<16x8xi32>
    %c2_i32 = arith.constant 2 : i32
    %5 = vector.broadcast %c2_i32 : i32 to vector<16x8xi32>
    %6 = arith.muli %4, %5 : vector<16x8xi32>
    %c0_i32 = arith.constant 0 : i32
    %7 = vector.broadcast %c0_i32 : i32 to vector<16x8xi32>
    %8 = arith.addi %6, %7 : vector<16x8xi32>
    %9 = arith.cmpi eq, %3, %8 : vector<16x8xi32>
    %cst = arith.constant 1.000000e+00 : f32
    %cst_2 = arith.constant 0.000000e+00 : f32
    %10 = vector.broadcast %cst : f32 to vector<16x8xf32>
    %11 = vector.broadcast %cst_2 : f32 to vector<16x8xf32>
    %12 = arith.select %9, %10, %11 : vector<16x8xi1>, vector<16x8xf32>
    %cst_3 = arith.constant dense<0.000000e+00> : vector<16x8xf32>
    %13 = tpu.matmul %2, %12, %cst_3 {dimension_numbers = #tpu.dot_dimension_numbers<[1], [0], [0], [1], [0, 0, 1, 1], [], []>, precision = #tpu.contract_precision<fp32>} : vector<16x16xf32>, vector<16x8xf32>, vector<16x8xf32> -> vector<16x8xf32>
    %c2_i32_4 = arith.constant 2 : i32
    %14 = vector.broadcast %c2_i32_4 : i32 to vector<16x8xi32>
    %15 = arith.muli %4, %14 : vector<16x8xi32>
    %c1_i32 = arith.constant 1 : i32
    %16 = vector.broadcast %c1_i32 : i32 to vector<16x8xi32>
    %17 = arith.addi %15, %16 : vector<16x8xi32>
    %18 = arith.cmpi eq, %3, %17 : vector<16x8xi32>
    %cst_5 = arith.constant 1.000000e+00 : f32
    %cst_6 = arith.constant 0.000000e+00 : f32
    %19 = vector.broadcast %cst_5 : f32 to vector<16x8xf32>
    %20 = vector.broadcast %cst_6 : f32 to vector<16x8xf32>
    %21 = arith.select %18, %19, %20 : vector<16x8xi1>, vector<16x8xf32>
    %cst_7 = arith.constant dense<0.000000e+00> : vector<16x8xf32>
    %22 = tpu.matmul %2, %21, %cst_7 {dimension_numbers = #tpu.dot_dimension_numbers<[1], [0], [0], [1], [0, 0, 1, 1], [], []>, precision = #tpu.contract_precision<fp32>} : vector<16x16xf32>, vector<16x8xf32>, vector<16x8xf32> -> vector<16x8xf32>
    %23 = arith.maximumf %13, %22 : vector<16x8xf32>
    %c0_8 = arith.constant 0 : index
    %c0_9 = arith.constant 0 : index
    %24 = vector.load %arg2[%c0_8, %c0_9] : memref<16x8xf32, #tpu.memory_space<vmem>>, vector<16x8xf32>
    tpu.vector_store %arg2[%c0_8, %c0_9], %23 {strides = array<i32>} : memref<16x8xf32, #tpu.memory_space<vmem>>, vector<16x8xf32>,
    return
  }
  func.func @transform_0(%arg0: i32) -> (i32, i32) {
    %c0_i32 = arith.constant 0 : i32
    %c0_i32_0 = arith.constant 0 : i32
    return %arg0, %c0_i32 : i32, i32
  }
  func.func @transform_1(%arg0: i32) -> (i32, i32) {
    %c0_i32 = arith.constant 0 : i32
    %c0_i32_0 = arith.constant 0 : i32
    return %arg0, %c0_i32 : i32, i32
  }
}

</mosaic_0001>

<bundles_post_ra>
// kernel: tpu_custom_call.1
= control target key start
LH: loop header
LB: loop body
LE: loop exit
PB: predicated region body
PF: predicated region fallthrough
CT: control target
= control target key end

     0   :  { %s1448_s6 = smov 0   ;;  %s1543_s0 = inlined_call_operand.vmem [shape: f32[128,16], index: 0, kind: input, shape index: {}]   ;;  %s1544_s1 = inlined_call_operand.vmem [shape: f32[64,8], index: 1, kind: output, shape index: {}]  }
   0x1 LB: > { %s1192_s7 = sadd.s32 4294967295, %s1434_s6   ;;  %p1196_p0 = scmp.ge.s32.totalorder %s1434_s6, 1  ;;  %s1434_s6 = sphi %s1448_s6, %s11_s6  }
   0x2   : > { %p88_p1 = scmp.lt.s32.totalorder %s1434_s6, 5 }
   0x4   : > { %p89_p2 = pnand %p1196_p0, %p88_p1 }
   0x5   : > { %v129_v0 = vlaneseq (!%p89_p2)  ;;  %s1197_s8 = sshll.u32 (!%p89_p2), %s1192_s7, 2  ;;  %vm139_vm2 = vcmask (!%p89_p2), 130048   ;;  %v1436_v6 = vmov (!%p89_p2), 0.0   ;;  %v1437_v12 = vmov (!%p89_p2), 1.0|1.0   ;;  %s1199_s13 = sshll.u32 (!%p89_p2), %s1192_s7, 1 }
   0x6   : > { %92 = sbr.rel (%p89_p2) target bundleno = 287 (0x11f), region = 24  ;;  %p109_p3 = scmp.lt.s32.totalorder (!%p89_p2), %s1197_s8, 15  ;;  %vm1133_vm7 = vcmask (!%p89_p2), 64512  }
   0x7   : > { %v130_v1 = vshrl.u32 (!%p89_p2), %v129_v0, 7  ;;  %v133_v2 = vand.u32 (!%p89_p2), 127, %v129_v0  ;;  %p115_p4 = scmp.lt.s32.totalorder (!%p89_p2), %s1199_s13, 7 }
   0x9   : > { %v131_v3 = vadd.s32 (!%p89_p2), 8, %v130_v1  ;;  %v134_v4 = vmul.u32 (!%p89_p2), 2, %v133_v2 }
   0xb   : > { %vm135_vm0 = vcmp.eq.s32.totalorder (!%p89_p2), %v130_v1, %v134_v4  ;;  %vm136_vm1 = vcmp.eq.s32.totalorder (!%p89_p2), %v131_v3, %v134_v4  ;;  %v636_v5 = vadd.s32 (!%p89_p2), 1, %v134_v4 }
   0xc   : > { %v137_v7 = vsel (!%p89_p2), %vm135_vm0, 1.0, %v1436_v6  ;;  %v138_v8 = vsel (!%p89_p2), %vm136_vm1, 1.0, %v1436_v6  ;;  %vm1461_vm3 = vmpackc.low (!%p89_p2), %vm136_vm1, %vm135_vm0 }
   0xd   : > { %s1550_s8 = smov (!%p109_p3, %s1197_s8), 15  ;;  %1351 = vmatprep.subr.msk.bf16.mxu0 %vm1461_vm3, %v1437_v12  ;;  %v1468_v13 = vsub.f32 %v137_v7, %v137_v7  ;;  %v1470_v14 = vsub.f32 %v138_v8, %v138_v8  ;;  %vm637_vm4 = vcmp.eq.s32.totalorder %v130_v1, %v636_v5  ;;  %vm638_vm5 = vcmp.eq.s32.totalorder %v131_v3, %v636_v5  ;;  %s1552_s13 = smov (!%p115_p4, %s1199_s13), 7 }
   0xe   : > { %s1198_s9 = sshll.u32 %s1550_s8, 3  ;;  %v639_v17 = vsel %vm637_vm4, 1.0, %v1436_v6  ;;  %v640_v18 = vsel %vm638_vm5, 1.0, %v1436_v6  ;;  %vm1472_vm6 = vmpackc.low %vm638_vm5, %vm637_vm4  ;;  %1353 = vmatpush3.bf16.msk.msra.mxu0 %vm1461_vm3, %v1437_v12  ;;  %s1200_s14 = sshll.u32 %s1552_s13, 3 }
   0xf   : > { %s112_s12 = scalar_lea.vmem %s1543_s0, %s1198_s9  ;;  %1375 = vmatprep.subr.msk.bf16.mxu1 %vm1472_vm6, %v1437_v12  ;;  %v727_v22 = vsub.f32 %v639_v17, %v639_v17  ;;  %v733_v23 = vsub.f32 %v640_v18, %v640_v18  ;;  %v233_v24 = vand.u32 4294901760, %v1468_v13  ;;  %v239_v25 = vand.u32 4294901760, %v1470_v14  ;;  %s118_s17 = scalar_lea.vmem %s1544_s1, %s1200_s14 }
  0x10   : > { %v120_v10 = vld [vmem:[%s112_s12] ss:$2 sm:$0xff]  ;;  %v1201_v11 = vld [vmem:[%s112_s12 + $0x10] ss:$2 sm:$0xff]  ;;  %v1202_v15 = vld [vmem:[%s112_s12 + $0x1] ss:$2 sm:$0xff]  ;;  %1377 = vmatpush3.bf16.msk.msra.mxu1 %vm1472_vm6, %v1437_v12  ;;  %v1358_v50 = vpack.c.bf16 %v1470_v14, %v1468_v13 }
  0x11   : > { %v1203_v16 = vld [vmem:[%s112_s12 + $0x11] ss:$2 sm:$0xff]  ;;  %v127_v20 = vmax.f32 %v120_v10, %v1202_v15  ;;  %v234_v30 = vsub.f32 %v1468_v13, %v233_v24  ;;  %v240_v31 = vsub.f32 %v1470_v14, %v239_v25  ;;  %v728_v32 = vand.u32 4294901760, %v727_v22 }
  0x12   : > { %v128_v21 = vmax.f32 %v1201_v11, %v1203_v16  ;;  %v734_v33 = vand.u32 4294901760, %v733_v23  ;;  %v1382_v51 = vpack.c.bf16 %v733_v23, %v727_v22  ;;  %v1366_v52 = vpack.c.bf16 %v239_v25, %v233_v24 }
  0x13   : > { %v141_v26 = vsel %vm139_vm2, %v127_v20, 0  ;;  %v235_v35 = vand.u32 4294901760, %v234_v30  ;;  %v241_v36 = vand.u32 4294901760, %v240_v31  ;;  %v729_v38 = vsub.f32 %v727_v22, %v728_v32 }
  0x14   : > { %v144_v27 = vsel %vm139_vm2, %v128_v21, 0  ;;  %v1489_v28 = vand.u32 4294901760, %v141_v26  ;;  %v735_v39 = vsub.f32 %v733_v23, %v734_v33  ;;  %v1390_v53 = vpack.c.bf16 %v734_v33, %v728_v32 }
  0x15   : > { %v1491_v29 = vand.u32 4294901760, %v144_v27  ;;  %v1354_v41 = vpack.c.bf16 %v241_v36, %v235_v35  ;;  %v730_v43 = vand.u32 4294901760, %v729_v38 }
  0x16   : > { %v212_v34 = vsub.f32 %v141_v26, %v1489_v28  ;;  %v736_v44 = vand.u32 4294901760, %v735_v39 }
  0x17   : > { %v222_v37 = vsub.f32 %v144_v27, %v1491_v29  ;;  %1355 = vmatprep.subr.bf16.mxu0 %v1354_v41 }
  0x18   : > { %v213_v40 = vand.u32 4294901760, %v212_v34  ;;  %v1378_v47 = vpack.c.bf16 %v736_v44, %v730_v43 }
  0x19   : > { %v223_v42 = vand.u32 4294901760, %v222_v37 }
  0x1a   : > { %v214_v45 = vsub.f32 %v212_v34, %v213_v40  ;;  %1379 = vmatprep.subr.bf16.mxu1 %v1378_v47 }
  0x1b   : > { %v224_v46 = vsub.f32 %v222_v37, %v223_v42 }
  0x1c   : > { %v215_v48 = vand.u32 4294901760, %v214_v45 }
  0x1d   : > { %v225_v49 = vand.u32 4294901760, %v224_v46 }
  0x1e   : > { %1270 = vmatprep.mubr.f32.mxu0 %v215_v48  ;;  %1312 = vmatprep.mubr.f32.mxu1 %v215_v48 }
  0x1f   : > { %1271 = vmatmul.mubr.f32.vlgmr.msra.gmra.mrb[0].mxu0 %v225_v49  ;;  %1313 = vmatmul.mubr.f32.vlgmr.msra.gmra.mrb[0].mxu1 %v225_v49 }
  0x20   : > { %1357 = vmatpush3.bf16.msra.mxu0 %v1354_v41  ;;  %1381 = vmatpush3.bf16.msra.mxu1 %v1378_v47 }
  0x21   : > { %1277 = vmatprep.mubr.f32.mxu0 %v1489_v28  ;;  %1359 = vmatprep.subr.bf16.mxu0 %v1358_v50 }
  0x22   : > { %1319 = vmatprep.mubr.f32.mxu1 %v1489_v28  ;;  %1383 = vmatprep.subr.bf16.mxu1 %v1382_v51 }
  0x27   : > { %1278 = vmatmul.mubr.f32.vlgmr.msra.gmra.mrb[0].mxu0 %v1491_v29  ;;  %1320 = vmatmul.mubr.f32.vlgmr.msra.gmra.mrb[0].mxu1 %v1491_v29 }
  0x28   : > { %1361 = vmatpush3.bf16.msra.mxu0 %v1358_v50  ;;  %1385 = vmatpush3.bf16.msra.mxu1 %v1382_v51 }
  0x29   : > { %1284 = vmatprep.mubr.f32.mxu0 %v212_v34  ;;  %1363 = vmatprep.subr.msk.bf16.mxu0 %vm1461_vm3, %v1437_v12 }
  0x2a   : > { %1326 = vmatprep.mubr.f32.mxu1 %v212_v34  ;;  %1387 = vmatprep.subr.msk.bf16.mxu1 %vm1472_vm6, %v1437_v12 }
  0x2f   : > { %1285 = vmatmul.mubr.f32.vlgmr.msra.gmra.mrb[0].mxu0 %v222_v37  ;;  %1327 = vmatmul.mubr.f32.vlgmr.msra.gmra.mrb[0].mxu1 %v222_v37 }
  0x30   : > { %1365 = vmatpush3.bf16.msk.msra.mxu0 %vm1461_vm3, %v1437_v12  ;;  %1389 = vmatpush3.bf16.msk.msra.mxu1 %vm1472_vm6, %v1437_v12 }
  0x31   : > { %1291 = vmatprep.mubr.f32.mxu0 %v213_v40  ;;  %1367 = vmatprep.subr.bf16.mxu0 %v1366_v52 }
  0x32   : > { %1333 = vmatprep.mubr.f32.mxu1 %v213_v40  ;;  %1391 = vmatprep.subr.bf16.mxu1 %v1390_v53 }
  0x37   : > { %1292 = vmatmul.mubr.f32.vlgmr.msra.gmra.mrb[0].mxu0 %v223_v42  ;;  %1334 = vmatmul.mubr.f32.vlgmr.msra.gmra.mrb[0].mxu1 %v223_v42 }
  0x38   : > { %1369 = vmatpush3.bf16.msra.mxu0 %v1366_v52  ;;  %1393 = vmatpush3.bf16.msra.mxu1 %v1390_v53 }
  0x39   : > { %1298 = vmatprep.mubr.f32.mxu0 %v1489_v28  ;;  %1371 = vmatprep.subr.msk.bf16.mxu0 %vm1461_vm3, %v1437_v12 }
  0x3a   : > { %1340 = vmatprep.mubr.f32.mxu1 %v1489_v28  ;;  %1395 = vmatprep.subr.msk.bf16.mxu1 %vm1472_vm6, %v1437_v12 }
  0x3f   : > { %1299 = vmatmul.mubr.f32.vlgmr.msra.gmra.mrb[0].mxu0 %v1491_v29  ;;  %1341 = vmatmul.mubr.f32.vlgmr.msra.gmra.mrb[0].mxu1 %v1491_v29 }
  0x40   : > { %1373 = vmatpush3.bf16.msk.msra.mxu0 %vm1461_vm3, %v1437_v12  ;;  %1397 = vmatpush3.bf16.msk.msra.mxu1 %vm1472_vm6, %v1437_v12 }
  0x41   : > { %1305 = vmatprep.mubr.f32.mxu0 %v1489_v28  ;;  %1347 = vmatprep.mubr.f32.mxu1 %v1489_v28 }
  0x47   : > { %1306 = vmatmul.mubr.f32.vlgmr.msra.gmra.mrb[0].mxu0 %v1491_v29  ;;  %1348 = vmatmul.mubr.f32.vlgmr.msra.gmra.mrb[0].mxu1 %v1491_v29 }
 0x11a   : > { %v1307_v54 = vpop.f32.mrb[0].mxu0  ;;  %v1349_v55 = vpop.f32.mrb[0].mxu1 }
 0x11b   : > { %v1132_v56 = vmax.f32 %v1307_v54, %v1349_v55  ;;  %v626_v57 = vpop.f32.mrb[1].mxu0  ;;  %v1121_v58 = vpop.f32.mrb[1].mxu1 }
 0x11c   : > { %v1131_v59 = vmax.f32 %v626_v57, %v1121_v58 }
 0x11d   : > { %1135 = vst.msk [vmem:[%s118_s17 + $0x8] sm:$0xff] %vm1133_vm7, %v1132_v56 }
 0x11e   : > { %1134 = vst.msk [vmem:[%s118_s17] sm:$0xff] %vm1133_vm7, %v1131_v59 }
 0x11f PF: > { %s11_s6 = sadd.s32 1, %s1434_s6  }
 0x120   : > { %p8_p5 = scmp.ge.s32.totalorder %s11_s6, 6  }
 0x122   :  { %10 = sbr.rel (!%p8_p5) target bundleno = 1 (0x1), region = 57 }

</bundles_post_ra>
